<compile_context>
chip_gen: v7x
topology: tpu7x:2x2x1
jax: 0.10.0
libtpu: 0.0.40
codegen_flags: <defaults>
</compile_context>

<pallas_src>
import jax
import jax.numpy as jnp
from jax.experimental import pallas as pl
from jax.experimental.pallas import tpu as pltpu

# ----------------------------- configuration -------------------------------
IMG_SIZE = 128         # 'size' argument of autoShape.forward (== image size here)
STRIDE = 8             # self.stride.max()
NC = 3                 # number of classes
NO = 5 + NC            # xywh + obj + classes
HIDDEN = 32            # hidden width of the synthetic detection head
K_IN = 3 * STRIDE * STRIDE
CONF_THRES = 0.25      # autoShape.conf
SLAB_ROWS = 32         # 4 groups (xyxy/xywh/xyxyn/xywhn) x 8 sublane-aligned rows
# Lane tile over the detection axis.  128 for the toy demo; at realistic YOLO
# sizes raise to 2048-8192 (<= ~8192 f32 cols on v5e's 16 MiB default scoped
# VMEM, or raise vmem_limit_bytes via pltpu.CompilerParams).
TILE_R = 128
NAMES = [f"class{i}" for i in range(NC)]


def _round_up(x, m):
    return ((x + m - 1) // m) * m


# ------------------------------ kernel math ---------------------------------
def _head_math(x_bf16, w1_ref, b1_ref, w2_ref, b2_ref, scale_ref):
    """Channel-major synthetic YOLO head: (K, T) bf16 -> (NO, T) f32.

    patchify-conv (as matmul) -> ReLU -> 1x1 conv -> sigmoid -> scale xywh.
    bf16 MXU matmuls with f32 accumulation; all post-matmul elementwise in f32
    (v5e's VPU/EUP have no bf16).
    """
    h = jnp.dot(w1_ref[...], x_bf16, preferred_element_type=jnp.float32)
    h = jnp.maximum(h + b1_ref[...], 0.0)
    z = jnp.dot(w2_ref[...], h.astype(jnp.bfloat16),
                preferred_element_type=jnp.float32) + b2_ref[...]
    return jax.nn.sigmoid(z) * scale_ref[...]          # rows 0..3 (xywh) -> pixels


def _head_kernel(x_ref, w1_ref, b1_ref, w2_ref, b2_ref, scale_ref, o_ref):
    # torch.Tensor fast path: raw model output (no /255, as in the original).
    o_ref[...] = _head_math(x_ref[...], w1_ref, b1_ref, w2_ref, b2_ref, scale_ref)


def _fused_kernel(gn_ref, x_ref, w1_ref, b1_ref, w2_ref, b2_ref, scale_ref,
                  o_ref):
    t = o_ref.shape[1]
    img = pl.program_id(0)

    # ---- model (1/255 already folded into w1 by the wrapper) ---------------
    y = _head_math(x_ref[...], w1_ref, b1_ref, w2_ref, b2_ref, scale_ref)  # (NO,T)

    # ---- non_max_suppression front half: xywh -> xyxy, conf, class ---------
    xy, wh, obj = y[0:2, :], y[2:4, :], y[4:5, :]
    x1y1 = xy - wh * 0.5
    x2y2 = xy + wh * 0.5

    # conf = max_c(cls_c * obj); class = lowest index achieving it.
    # Full 8-sublane block ops: mask non-class rows to -inf via sublane iota.
    row = jax.lax.broadcasted_iota(jnp.int32, (NO, t), 0)
    scores = jnp.where(row >= 5, y * obj, -jnp.inf)                  # (NO, T)
    conf = jnp.max(scores, axis=0, keepdims=True)                    # (1, T)
    cls_idx = jnp.min(jnp.where(scores >= conf,
                                (row - 5).astype(jnp.float32),
                                jnp.float32(NC)),
                      axis=0, keepdims=True)                         # (1, T)

    # confidence-threshold zero-mask (fixed-shape stand-in for NMS).
    keep = conf > jnp.float32(CONF_THRES)
    x1y1 = jnp.where(keep, x1y1, 0.0)
    x2y2 = jnp.where(keep, x2y2, 0.0)
    conf = jnp.where(keep, conf, 0.0)
    cls_idx = jnp.where(keep, cls_idx, 0.0)

    # ---- Detections statistics: xyxy2xywh + per-image gn=[W,H] -------------
    cxcy = (x1y1 + x2y2) * 0.5
    whab = x2y2 - x1y1
    w_px = gn_ref[img, 0].astype(jnp.float32)        # SMEM scalars (prefetch)
    h_px = gn_ref[img, 1].astype(jnp.float32)
    row2 = jax.lax.broadcasted_iota(jnp.int32, (2, t), 0)
    # approx reciprocal (EUP slot); ~1e-3 rel error vs exact torch division.
    inv_wh = pl.reciprocal(jnp.where(row2 == 0, w_px, h_px), approx=True)

    # ---- packed output slab: four aligned 8-row groups, ONE full store -----
    cc = jnp.concatenate([conf, cls_idx], axis=0)                    # (2, T)
    pad2 = jnp.zeros((2, t), jnp.float32)
    g_xyxy = jnp.concatenate([x1y1, x2y2, cc, pad2], axis=0)
    g_xywh = jnp.concatenate([cxcy, whab, cc, pad2], axis=0)
    g_xyxyn = jnp.concatenate([x1y1 * inv_wh, x2y2 * inv_wh, cc, pad2], axis=0)
    g_xywhn = jnp.concatenate([cxcy * inv_wh, whab * inv_wh, cc, pad2], axis=0)
    o_ref[...] = jnp.concatenate([g_xyxy, g_xywh, g_xyxyn, g_xywhn], axis=0)


# ------------------------------- wrappers -----------------------------------
@jax.jit
def _forward_list(gn_i32, x_nhwc, scale_col, w1, b1, w2, b2):
    n, hh, ww, c = x_nhwc.shape
    gh, gw = hh // STRIDE, ww // STRIDE
    p = gh * gw
    p_pad = _round_up(p, TILE_R)
    r_tiles = p_pad // TILE_R

    # /255 folded into w1 (the head is linear in x); scale in f32, then bf16.
    w1b = (w1 * jnp.float32(1.0 / 255.0)).astype(jnp.bfloat16)
    w2b = w2.astype(jnp.bfloat16)

    # Single fused NHWC -> channel-major im2col reorder, done in bf16
    # (replaces the previous NHWC->NCHW transpose + patchify transpose pair).
    x = x_nhwc.astype(jnp.bfloat16).reshape(n, gh, STRIDE, gw, STRIDE, c)
    x_t = jnp.transpose(x, (5, 2, 4, 0, 1, 3)).reshape(K_IN, n, p)
    if p_pad != p:
        x_t = jnp.pad(x_t, ((0, 0), (0, 0), (0, p_pad - p)))
    x_t = x_t.reshape(K_IN, n * p_pad)                 # image-major columns

    xmap = lambda i, t, gn: (0, i * r_tiles + t)       # streamed tiles
    cmap = lambda i, t, gn: (0, 0)                     # VMEM-resident operands

    slab = pl.pallas_call(
        _fused_kernel,
        out_shape=jax.ShapeDtypeStruct((SLAB_ROWS, n * p_pad), jnp.float32),
        grid_spec=pltpu.PrefetchScalarGridSpec(
            num_scalar_prefetch=1,                     # gn_i32 -> SMEM
            grid=(n, r_tiles),
            in_specs=[
                pl.BlockSpec((K_IN, TILE_R), xmap),    # x tile (bf16)
                pl.BlockSpec((HIDDEN, K_IN), cmap),    # w1 (bf16, /255 folded)
                pl.BlockSpec((HIDDEN, 1), cmap),       # b1 (f32)
                pl.BlockSpec((NO, HIDDEN), cmap),      # w2 (bf16)
                pl.BlockSpec((NO, 1), cmap),           # b2 (f32)
                pl.BlockSpec((NO, 1), cmap),           # xywh pixel scale
            ],
            out_specs=pl.BlockSpec((SLAB_ROWS, TILE_R), xmap),
        ),
        compiler_params=pltpu.CompilerParams(
            dimension_semantics=("parallel", "parallel")),
    )(gn_i32, x_t, w1b, b1, w2b, b2, scale_col)
    return slab                                        # (32, n * p_pad)


@jax.jit
def _forward_tensor(x_nchw, scale_col, w1, b1, w2, b2):
    n, c, hh, ww = x_nchw.shape
    gh, gw = hh // STRIDE, ww // STRIDE
    p = gh * gw
    r = n * p
    r_pad = _round_up(r, TILE_R)
    r_tiles = r_pad // TILE_R

    w1b = w1.astype(jnp.bfloat16)                      # fast path: no /255
    w2b = w2.astype(jnp.bfloat16)

    x = x_nchw.astype(jnp.bfloat16).reshape(n, c, gh, STRIDE, gw, STRIDE)
    x_t = jnp.transpose(x, (1, 3, 5, 0, 2, 4)).reshape(K_IN, r)
    if r_pad != r:
        x_t = jnp.pad(x_t, ((0, 0), (0, r_pad - r)))

    xmap = lambda t: (0, t)
    cmap = lambda t: (0, 0)
    y = pl.pallas_call(
        _head_kernel,
        out_shape=jax.ShapeDtypeStruct((NO, r_pad), jnp.float32),
        grid_spec=pltpu.PrefetchScalarGridSpec(
            num_scalar_prefetch=0,
            grid=(r_tiles,),
            in_specs=[
                pl.BlockSpec((K_IN, TILE_R), xmap),
                pl.BlockSpec((HIDDEN, K_IN), cmap),
                pl.BlockSpec((HIDDEN, 1), cmap),
                pl.BlockSpec((NO, HIDDEN), cmap),
                pl.BlockSpec((NO, 1), cmap),
                pl.BlockSpec((NO, 1), cmap),
            ],
            out_specs=pl.BlockSpec((NO, TILE_R), xmap),
        ),
        compiler_params=pltpu.CompilerParams(
            dimension_semantics=("parallel",)),
    )(x_t, w1b, b1, w2b, b2, scale_col)
    # Channel-major raw head output (NO, n, p); the torch layout (n, p, NO) is
    # a cheap per-image transpose left to callers (avoids a full HBM transpose).
    return y[:, :r].reshape(NO, n, p)


class Detections:
    """JAX analogue of models.common.Detections (data members only)."""

    def __init__(self, imgs, pred, xywh, xyxyn, xywhn, names):
        self.imgs = imgs
        self.pred = pred
        self.names = names
        self.xyxy = pred
        self.xywh = xywh
        self.xyxyn = xyxyn
        self.xywhn = xywhn
        self.n = len(pred)

    def __len__(self):
        return self.n


def auto_shape_forward(imgs, params, size=IMG_SIZE):
    """Mirror autoShape.forward for a list of HWC images (or a 4-D array)."""
    w1, b1, w2, b2 = params
    # xywh pixel-scale vector, built once per call (no recompile per `size`).
    scale_col = jnp.concatenate(
        [jnp.full((4, 1), float(size), jnp.float32),
         jnp.ones((NO - 4, 1), jnp.float32)], axis=0)

    # torch.Tensor fast path: 4-D array feeds the model directly.
    if isinstance(imgs, jnp.ndarray) and imgs.ndim == 4:
        return _forward_tensor(imgs, scale_col, w1, b1, w2, b2)

    if not isinstance(imgs, (list, tuple)):
        imgs = [imgs]
    n = len(imgs)
    # shape0 == shape1 == (size, size): letterbox / scale_coords are identities.
    x = jnp.stack([jnp.asarray(im, jnp.float32) for im in imgs], 0)       # NHWC
    p = (x.shape[1] // STRIDE) * (x.shape[2] // STRIDE)
    p_pad = _round_up(p, TILE_R)

    # per-image gn = [W, H] (conf/cls divide by 1 -> omitted), via SMEM prefetch.
    gn_i32 = jnp.asarray([[im.shape[1], im.shape[0]] for im in imgs], jnp.int32)

    slab = _forward_list(gn_i32, x, scale_col, w1, b1, w2, b2)   # (32, n*p_pad)
    slab = slab.reshape(SLAB_ROWS, n, p_pad)                     # free reshape

    # Only the tiny (6, p) per-image views are transposed (cheap, lazy).
    pred = [jnp.transpose(slab[0:6, i, :p]) for i in range(n)]
    xywh = [jnp.transpose(slab[8:14, i, :p]) for i in range(n)]
    xyxyn = [jnp.transpose(slab[16:22, i, :p]) for i in range(n)]
    xywhn = [jnp.transpose(slab[24:30, i, :p]) for i in range(n)]
    return Detections(imgs, pred, xywh, xyxyn, xywhn, NAMES)


def init_params(key):
    # Channel-major weights: w1 (HIDDEN, K), w2 (NO, HIDDEN), column biases.
    k1, k2 = jax.random.split(key)
    w1 = jax.random.normal(k1, (HIDDEN, K_IN), jnp.float32) * 0.05
    b1 = jnp.zeros((HIDDEN, 1), jnp.float32)
    w2 = jax.random.normal(k2, (NO, HIDDEN), jnp.float32) * 0.05
    b2 = jnp.zeros((NO, 1), jnp.float32)
    return w1, b1, w2, b2


if __name__ == "__main__":
    key = jax.random.PRNGKey(0)
    pkey, ikey = jax.random.split(key)
    params = init_params(pkey)

    # two "images": HWC, values in [0, 255]
    imgs = [
        jax.random.uniform(jax.random.fold_in(ikey, i),
                           (IMG_SIZE, IMG_SIZE, 3), jnp.float32,
                           minval=0.0, maxval=255.0)
        for i in range(2)
    ]

    det = auto_shape_forward(imgs, params, size=IMG_SIZE)
    jax.block_until_ready(det.pred)
    jax.block_until_ready(det.xywh)
    jax.block_until_ready(det.xyxyn)
    jax.block_until_ready(det.xywhn)

    p = (IMG_SIZE // STRIDE) ** 2
    assert det.pred[0].shape == (p, 6)
    assert det.xywh[0].shape == (p, 6)
    assert len(det) == 2

    # torch.Tensor fast path: raw channel-major head output (NO, n, p).
    x_nchw = jnp.transpose(jnp.stack(imgs, 0), (0, 3, 1, 2))
    y = auto_shape_forward(x_nchw, params, size=IMG_SIZE)
    jax.block_until_ready(y)
    assert y.shape == (NO, 2, p)

    print("KERNEL_OK")
</pallas_src>

<mosaic_0001>
module attributes {stable_mosaic.version = 11 : i64} {
  func.func @_fused_kernel(%arg0: i32, %arg1: i32, %arg2: memref<2x2xi32, #tpu.memory_space<smem>>, %arg3: memref<192x128xbf16, #tpu.memory_space<vmem>>, %arg4: memref<32x192xbf16, #tpu.memory_space<vmem>>, %arg5: memref<32x1xf32, #tpu.memory_space<vmem>>, %arg6: memref<8x32xbf16, #tpu.memory_space<vmem>>, %arg7: memref<8x1xf32, #tpu.memory_space<vmem>>, %arg8: memref<8x1xf32, #tpu.memory_space<vmem>>, %arg9: memref<32x128xf32, #tpu.memory_space<vmem>>) attributes {dimension_semantics = [#tpu.dimension_semantics<parallel>, #tpu.dimension_semantics<parallel>], iteration_bounds = array<i64: 2, 2>, scalar_prefetch = 1 : i64, scratch_operands = 0 : i64, tpu.core_type = #tpu.core_type<tc>, window_params = [{transform_indices = @transform_0, window_bounds = array<i64: 192, 128>}, {pipeline_mode = #tpu.pipeline_mode<synchronous>, transform_indices = @transform_1, window_bounds = array<i64: 32, 192>}, {pipeline_mode = #tpu.pipeline_mode<synchronous>, transform_indices = @transform_2, window_bounds = array<i64: 32, 1>}, {pipeline_mode = #tpu.pipeline_mode<synchronous>, transform_indices = @transform_3, window_bounds = array<i64: 8, 32>}, {pipeline_mode = #tpu.pipeline_mode<synchronous>, transform_indices = @transform_4, window_bounds = array<i64: 8, 1>}, {pipeline_mode = #tpu.pipeline_mode<synchronous>, transform_indices = @transform_5, window_bounds = array<i64: 8, 1>}, {transform_indices = @transform_6, window_bounds = array<i64: 32, 128>}]} {
    %c0 = arith.constant 0 : index
    %c0_0 = arith.constant 0 : index
    %0 = vector.load %arg3[%c0, %c0_0] : memref<192x128xbf16, #tpu.memory_space<vmem>>, vector<192x128xbf16>
    %c0_1 = arith.constant 0 : index
    %c0_2 = arith.constant 0 : index
    %1 = vector.load %arg4[%c0_1, %c0_2] : memref<32x192xbf16, #tpu.memory_space<vmem>>, vector<32x192xbf16>
    %cst = arith.constant dense<0.000000e+00> : vector<32x128xf32>
    %2 = tpu.matmul %1, %0, %cst {dimension_numbers = #tpu.dot_dimension_numbers<[1], [0], [0], [1], [0, 0, 1, 1], [], []>} : vector<32x192xbf16>, vector<192x128xbf16>, vector<32x128xf32> -> vector<32x128xf32>
    %c0_3 = arith.constant 0 : index
    %c0_4 = arith.constant 0 : index
    %3 = vector.load %arg5[%c0_3, %c0_4] : memref<32x1xf32, #tpu.memory_space<vmem>>, vector<32x1xf32>
    %4 = vector.broadcast %3 : vector<32x1xf32> to vector<32x128xf32>
    %5 = arith.addf %2, %4 : vector<32x128xf32>
    %cst_5 = arith.constant 0.000000e+00 : f32
    %6 = vector.broadcast %cst_5 : f32 to vector<32x128xf32>
    %7 = arith.maximumf %5, %6 : vector<32x128xf32>
    %c0_6 = arith.constant 0 : index
    %c0_7 = arith.constant 0 : index
    %8 = vector.load %arg6[%c0_6, %c0_7] : memref<8x32xbf16, #tpu.memory_space<vmem>>, vector<8x32xbf16>
    %9 = arith.truncf %7 : vector<32x128xf32> to vector<32x128xbf16>
    %cst_8 = arith.constant dense<0.000000e+00> : vector<8x128xf32>
    %10 = tpu.matmul %8, %9, %cst_8 {dimension_numbers = #tpu.dot_dimension_numbers<[1], [0], [0], [1], [0, 0, 1, 1], [], []>} : vector<8x32xbf16>, vector<32x128xbf16>, vector<8x128xf32> -> vector<8x128xf32>
    %c0_9 = arith.constant 0 : index
    %c0_10 = arith.constant 0 : index
    %11 = vector.load %arg7[%c0_9, %c0_10] : memref<8x1xf32, #tpu.memory_space<vmem>>, vector<8x1xf32>
    %12 = vector.broadcast %11 : vector<8x1xf32> to vector<8x128xf32>
    %13 = arith.addf %10, %12 : vector<8x128xf32>
    %14 = arith.negf %13 : vector<8x128xf32>
    %15 = math.exp %14 : vector<8x128xf32>
    %cst_11 = arith.constant 1.000000e+00 : f32
    %16 = vector.broadcast %cst_11 : f32 to vector<8x128xf32>
    %17 = arith.addf %16, %15 : vector<8x128xf32>
    %18 = arith.divf %16, %17 : vector<8x128xf32>
    %c0_12 = arith.constant 0 : index
    %c0_13 = arith.constant 0 : index
    %19 = vector.load %arg8[%c0_12, %c0_13] : memref<8x1xf32, #tpu.memory_space<vmem>>, vector<8x1xf32>
    %20 = vector.broadcast %19 : vector<8x1xf32> to vector<8x128xf32>
    %21 = arith.mulf %18, %20 : vector<8x128xf32>
    %22 = vector.extract_strided_slice %21 {offsets = [0, 0], sizes = [2, 128], strides = [1, 1]} : vector<8x128xf32> to vector<2x128xf32>
    %23 = vector.extract_strided_slice %21 {offsets = [2, 0], sizes = [2, 128], strides = [1, 1]} : vector<8x128xf32> to vector<2x128xf32>
    %24 = vector.extract_strided_slice %21 {offsets = [4, 0], sizes = [1, 128], strides = [1, 1]} : vector<8x128xf32> to vector<1x128xf32>
    %cst_14 = arith.constant 5.000000e-01 : f32
    %25 = vector.broadcast %cst_14 : f32 to vector<2x128xf32>
    %26 = arith.mulf %23, %25 : vector<2x128xf32>
    %27 = arith.subf %22, %26 : vector<2x128xf32>
    %cst_15 = arith.constant 5.000000e-01 : f32
    %28 = vector.broadcast %cst_15 : f32 to vector<2x128xf32>
    %29 = arith.mulf %23, %28 : vector<2x128xf32>
    %30 = arith.addf %22, %29 : vector<2x128xf32>
    %31 = tpu.iota {dimensions = array<i32: 0>} : vector<8x128xi32>
    %c5_i32 = arith.constant 5 : i32
    %32 = vector.broadcast %c5_i32 : i32 to vector<8x128xi32>
    %33 = arith.cmpi sge, %31, %32 : vector<8x128xi32>
    %34 = vector.broadcast %24 : vector<1x128xf32> to vector<8x128xf32>
    %35 = arith.mulf %21, %34 : vector<8x128xf32>
    %cst_16 = arith.constant 0xFF800000 : f32
    %36 = vector.broadcast %cst_16 : f32 to vector<8x128xf32>
    %37 = arith.select %33, %35, %36 : vector<8x128xi1>, vector<8x128xf32>
    %cst_17 = arith.constant dense<0xFF800000> : vector<128xf32>
    %38 = vector.multi_reduction <maximumf>, %37, %cst_17 [0] : vector<8x128xf32> to vector<128xf32>
    %39 = vector.shape_cast %38 : vector<128xf32> to vector<1x128xf32>
    %40 = vector.broadcast %39 : vector<1x128xf32> to vector<8x128xf32>
    %41 = arith.cmpf oge, %37, %40 : vector<8x128xf32>
    %c5_i32_18 = arith.constant 5 : i32
    %42 = vector.broadcast %c5_i32_18 : i32 to vector<8x128xi32>
    %43 = arith.subi %31, %42 : vector<8x128xi32>
    %44 = arith.sitofp %43 : vector<8x128xi32> to vector<8x128xf32>
    %cst_19 = arith.constant 3.000000e+00 : f32
    %45 = vector.broadcast %cst_19 : f32 to vector<8x128xf32>
    %46 = arith.select %41, %44, %45 : vector<8x128xi1>, vector<8x128xf32>
    %cst_20 = arith.constant dense<0x7F800000> : vector<128xf32>
    %47 = vector.multi_reduction <minimumf>, %46, %cst_20 [0] : vector<8x128xf32> to vector<128xf32>
    %48 = vector.shape_cast %47 : vector<128xf32> to vector<1x128xf32>
    %cst_21 = arith.constant 2.500000e-01 : f32
    %49 = vector.broadcast %cst_21 : f32 to vector<1x128xf32>
    %50 = arith.cmpf ogt, %39, %49 : vector<1x128xf32>
    %cst_22 = arith.constant 0.000000e+00 : f32
    %51 = vector.shape_cast %50 : vector<1x128xi1> to vector<1x128xi1>
    %52 = vector.broadcast %51 : vector<1x128xi1> to vector<2x128xi1>
    %53 = vector.broadcast %cst_22 : f32 to vector<2x128xf32>
    %54 = arith.select %52, %27, %53 : vector<2x128xi1>, vector<2x128xf32>
    %cst_23 = arith.constant 0.000000e+00 : f32
    %55 = vector.shape_cast %50 : vector<1x128xi1> to vector<1x128xi1>
    %56 = vector.broadcast %55 : vector<1x128xi1> to vector<2x128xi1>
    %57 = vector.broadcast %cst_23 : f32 to vector<2x128xf32>
    %58 = arith.select %56, %30, %57 : vector<2x128xi1>, vector<2x128xf32>
    %cst_24 = arith.constant 0.000000e+00 : f32
    %59 = vector.broadcast %cst_24 : f32 to vector<1x128xf32>
    %60 = arith.select %50, %39, %59 : vector<1x128xi1>, vector<1x128xf32>
    %cst_25 = arith.constant 0.000000e+00 : f32
    %61 = vector.broadcast %cst_25 : f32 to vector<1x128xf32>
    %62 = arith.select %50, %48, %61 : vector<1x128xi1>, vector<1x128xf32>
    %63 = arith.addf %54, %58 : vector<2x128xf32>
    %cst_26 = arith.constant 5.000000e-01 : f32
    %64 = vector.broadcast %cst_26 : f32 to vector<2x128xf32>
    %65 = arith.mulf %63, %64 : vector<2x128xf32>
    %66 = arith.subf %58, %54 : vector<2x128xf32>
    %67 = arith.index_cast %arg0 : i32 to index
    %c0_27 = arith.constant 0 : index
    %68 = memref.load %arg2[%67, %c0_27] : memref<2x2xi32, #tpu.memory_space<smem>>
    %69 = arith.sitofp %68 : i32 to f32
    %70 = arith.index_cast %arg0 : i32 to index
    %c1 = arith.constant 1 : index
    %71 = memref.load %arg2[%70, %c1] : memref<2x2xi32, #tpu.memory_space<smem>>
    %72 = arith.sitofp %71 : i32 to f32
    %73 = tpu.iota {dimensions = array<i32: 0>} : vector<2x128xi32>
    %c0_i32 = arith.constant 0 : i32
    %74 = vector.broadcast %c0_i32 : i32 to vector<2x128xi32>
    %75 = arith.cmpi eq, %73, %74 : vector<2x128xi32>
    %76 = vector.broadcast %69 : f32 to vector<2x128xf32>
    %77 = vector.broadcast %72 : f32 to vector<2x128xf32>
    %78 = arith.select %75, %76, %77 : vector<2x128xi1>, vector<2x128xf32>
    %79 = tpu.reciprocal %78 {approx = true} : vector<2x128xf32> -> vector<2x128xf32>
    %80 = tpu.concatenate %60, %62 in 0 : vector<1x128xf32>, vector<1x128xf32> -> vector<2x128xf32>
    %cst_28 = arith.constant 0.000000e+00 : f32
    %81 = vector.broadcast %cst_28 : f32 to vector<2x128xf32>
    %82 = tpu.concatenate %54, %58, %80, %81 in 0 : vector<2x128xf32>, vector<2x128xf32>, vector<2x128xf32>, vector<2x128xf32> -> vector<8x128xf32>
    %83 = tpu.concatenate %65, %66, %80, %81 in 0 : vector<2x128xf32>, vector<2x128xf32>, vector<2x128xf32>, vector<2x128xf32> -> vector<8x128xf32>
    %84 = arith.mulf %54, %79 : vector<2x128xf32>
    %85 = arith.mulf %58, %79 : vector<2x128xf32>
    %86 = tpu.concatenate %84, %85, %80, %81 in 0 : vector<2x128xf32>, vector<2x128xf32>, vector<2x128xf32>, vector<2x128xf32> -> vector<8x128xf32>
    %87 = arith.mulf %65, %79 : vector<2x128xf32>
    %88 = arith.mulf %66, %79 : vector<2x128xf32>
    %89 = tpu.concatenate %87, %88, %80, %81 in 0 : vector<2x128xf32>, vector<2x128xf32>, vector<2x128xf32>, vector<2x128xf32> -> vector<8x128xf32>
    %90 = tpu.concatenate %82, %83, %86, %89 in 0 : vector<8x128xf32>, vector<8x128xf32>, vector<8x128xf32>, vector<8x128xf32> -> vector<32x128xf32>
    %c0_29 = arith.constant 0 : index
    %c0_30 = arith.constant 0 : index
    %91 = vector.load %arg9[%c0_29, %c0_30] : memref<32x128xf32, #tpu.memory_space<vmem>>, vector<32x128xf32>
    tpu.vector_store %arg9[%c0_29, %c0_30], %90 {strides = array<i32>} : memref<32x128xf32, #tpu.memory_space<vmem>>, vector<32x128xf32>,
    return
  }
  func.func @transform_0(%arg0: i32, %arg1: i32, %arg2: memref<2x2xi32, #tpu.memory_space<smem>>) -> (i32, i32) {
    %c2_i32 = arith.constant 2 : i32
    %0 = arith.muli %arg0, %c2_i32 : i32
    %1 = arith.addi %0, %arg1 : i32
    %c0_i32 = arith.constant 0 : i32
    %c0_i32_0 = arith.constant 0 : i32
    return %c0_i32, %1 : i32, i32
  }
  func.func @transform_1(%arg0: i32, %arg1: i32, %arg2: memref<2x2xi32, #tpu.memory_space<smem>>) -> (i32, i32) {
    %c0_i32 = arith.constant 0 : i32
    %c0_i32_0 = arith.constant 0 : i32
    %c0_i32_1 = arith.constant 0 : i32
    return %c0_i32, %c0_i32_0 : i32, i32
  }
  func.func @transform_2(%arg0: i32, %arg1: i32, %arg2: memref<2x2xi32, #tpu.memory_space<smem>>) -> (i32, i32) {
    %c0_i32 = arith.constant 0 : i32
    %c0_i32_0 = arith.constant 0 : i32
    %c0_i32_1 = arith.constant 0 : i32
    return %c0_i32, %c0_i32_0 : i32, i32
  }
  func.func @transform_3(%arg0: i32, %arg1: i32, %arg2: memref<2x2xi32, #tpu.memory_space<smem>>) -> (i32, i32) {
    %c0_i32 = arith.constant 0 : i32
    %c0_i32_0 = arith.constant 0 : i32
    %c0_i32_1 = arith.constant 0 : i32
    return %c0_i32, %c0_i32_0 : i32, i32
  }
  func.func @transform_4(%arg0: i32, %arg1: i32, %arg2: memref<2x2xi32, #tpu.memory_space<smem>>) -> (i32, i32) {
    %c0_i32 = arith.constant 0 : i32
    %c0_i32_0 = arith.constant 0 : i32
    %c0_i32_1 = arith.constant 0 : i32
    return %c0_i32, %c0_i32_0 : i32, i32
  }
  func.func @transform_5(%arg0: i32, %arg1: i32, %arg2: memref<2x2xi32, #tpu.memory_space<smem>>) -> (i32, i32) {
    %c0_i32 = arith.constant 0 : i32
    %c0_i32_0 = arith.constant 0 : i32
    %c0_i32_1 = arith.constant 0 : i32
    return %c0_i32, %c0_i32_0 : i32, i32
  }
  func.func @transform_6(%arg0: i32, %arg1: i32, %arg2: memref<2x2xi32, #tpu.memory_space<smem>>) -> (i32, i32) {
    %c2_i32 = arith.constant 2 : i32
    %0 = arith.muli %arg0, %c2_i32 : i32
    %1 = arith.addi %0, %arg1 : i32
    %c0_i32 = arith.constant 0 : i32
    %c0_i32_0 = arith.constant 0 : i32
    return %c0_i32, %1 : i32, i32
  }
}

</mosaic_0001>

<bundles_post_ra>
// kernel: _forward_list.1
= control target key start
LH: loop header
LB: loop body
LE: loop exit
PB: predicated region body
PF: predicated region fallthrough
CT: control target
= control target key end

     0   :  { %s1447_s0 = inlined_call_operand.vmem [shape: s32[2,2], index: 0, kind: input, shape index: {}]   ;;  %s1448_s1 = inlined_call_operand.vmem [shape: bf16[192,512], index: 1, kind: input, shape index: {}]   ;;  %s1449_s2 = inlined_call_operand.vmem [shape: bf16[32,192], index: 2, kind: input, shape index: {}]   ;;  %s1450_s3 = inlined_call_operand.vmem [shape: f32[32,1], index: 3, kind: input, shape index: {}]   ;;  %s1451_s4 = inlined_call_operand.vmem [shape: bf16[8,32], index: 4, kind: input, shape index: {}]   ;;  %s1452_s5 = inlined_call_operand.vmem [shape: f32[8,1], index: 5, kind: input, shape index: {}]   ;;  %s1453_s6 = inlined_call_operand.vmem [shape: f32[8,1], index: 6, kind: input, shape index: {}]   ;;  %s1454_s7 = inlined_call_operand.hbm [shape: f32[32,512], index: 7, kind: output, shape index: {}]  }
   0x1   :  { %s12_s26 = sshll.u32 %s1447_s0, 4  ;;  %s13_s26 = int_to_ptr.vmem [resolvable:$true] %s12_s26 }
   0x2   :  { %s1031_s27 = scalar_lea.vmem %s13_s26, 32  ;;  %p1036_p1 = scmp.lt.s32.totalorder %s13_s26, %s13_s26 }
   0x3   :  { %p1032_p0 = scmp.ne.s32.totalorder %s13_s26, %s1031_s27  ;;  %p1037_p2 = scmp.lt.s32.totalorder %s1031_s27, %s1031_s27 }
   0x5   :  { %p1038_p3 = por %p1037_p2, %p1036_p1 }
   0x7   :  { %p1039_p4 = pnand %p1038_p3, %p1032_p0 }
   0x9   :  { %1042 = shalt.err (!%p1039_p4)  }
   0xa   :  { %s1141_s28 = smov [#allocation3]  }
   0xb   :  { %15 = dma.vmem_to_smem %s13_s26, 32, %s1141_s28, [#allocation2] }
   0xc   :  { %1103 = dma.done.wait [#allocation2], 32 }
   0xd   :  { %1104 = vsyncadd [#allocation2], 4294967264 }
   0xe   :  { %17 = sfence }
   0xf   :  { %18 = vsyncpa [#allocation6], 0 }
  0x10   :  { %20 = vsyncpa [#allocation6 + $0x1], 0  ;;  %s1192_s29 = smov 0   ;;  %s1194_s30 = smov 0  }
  0x11   :  { %s1196_s0 = smov 0   ;;  %s1198_s8 = smov 0  }
  0x12   :  { %s1200_s9 = smov 0   ;;  %s1202_s10 = smov 0  }
  0x13   :  { %s1204_s11 = smov 0   ;;  %s1206_s12 = smov 0  }
  0x14 LB: > { %s875_s13 = sadd.s32 4294967295, %s1139_s12   ;;  %s35_s14 = sadd.s32 1, %s1131_s10  ;;  %s1139_s12 = sphi %s1206_s12, %s26_s12   ;;  %s1135_s11 = sphi %s1204_s11, %s1464_s11   ;;  %s1131_s10 = sphi %s1202_s10, %s1463_s10   ;;  %s1127_s9 = sphi %s1200_s9, %s1462_s9   ;;  %s1123_s8 = sphi %s1198_s8, %s1461_s8   ;;  %s1119_s0 = sphi %s1196_s0, %s1460_s0   ;;  %s1115_s30 = sphi %s1194_s30, %s1459_s30   ;;  %s1111_s29 = sphi %s1192_s29, %s1458_s29  }
  0x15   : > { %s38_s15 = sadd.s32 1, %s1135_s11  ;;  %p36_p5 = scmp.ge.s32.totalorder %s35_s14, 2 }
  0x16   : > { %s877_s16 = sshll.u32 %s1135_s11, 1  ;;  %s876_s17 = sadd.s32 4294967294, %s1139_s12  }
  0x17   : > { %s43_s18 = sadd.s32 %s1131_s10, %s877_s16  ;;  %s1466_s14 = smov (%p36_p5, %s35_s14), 0 }
  0x18   : > { %s1468_s15 = smov (!%p36_p5, %s38_s15), %s1135_s11  ;;  %p56_p6 = scmp.ne.s32.totalorder %s1119_s0, %s1115_s30 }
  0x19   : > { %p57_p7 = scmp.eq.s32.totalorder %s1139_s12, 0  ;;  %p40_p8 = scmp.ge.s32.totalorder %s1468_s15, 2 }
  0x1a   : > { %p195_p9 = scmp.eq.s32.totalorder %s875_s13, 3  ;;  %p200_p11 = scmp.ne.s32.totalorder %s1115_s30, %s1111_s29 }
  0x1b   : > { %p1244_p10 = por %p57_p7, %p56_p6  ;;  %s1470_s15 = smov (%p40_p8, %s1468_s15), 0 }
  0x1c   : > { %p1252_p12 = por %p195_p9, %p56_p6  ;;  %p201_p13 = scmp.eq.s32.totalorder %s876_s17, 3 }
  0x1d   : > { %s878_s21 = sshll.u32 %s1470_s15, 1  ;;  %s49_s25 = sadd.s32 1, %s1119_s0 }
  0x1e   : > { %s45_s22 = sadd.s32 %s878_s21, %s1466_s14  ;;  %p1258_p0 = por %p201_p13, %p200_p11 }
  0x1f   : > { %s46_s24 = ssub.s32 %s43_s18, %s45_s22  ;;  %p882_p2 = scmp.ge.s32.totalorder %s1139_s12, 4 }
  0x20   : > { %p47_p1 = scmp.eq.s32.totalorder %s46_s24, 0 }
  0x21   : > { %232 = sbr.rel (%p882_p2) target bundleno = 60 (0x3c), region = 36 }
  0x22   : > { %s1264_s26 = scalar_select %p47_p1, %s1119_s0, %s49_s25  }
  0x28   : > { %235 = sbr.rel (!%p1244_p10) target bundleno = 60 (0x3c), region = 40  ;;  %s237_s27 = sand.u32 (%p1244_p10), 1, %s1119_s0  }
  0x29   : > { %s884_s28 = sshll.u32 (%p1244_p10), %s43_s18, 2  ;;  %s925_s13 = smul.u32 (%p1244_p10), 96, %s237_s27 }
  0x2a   : > { %s1273_s21 = scalar_lea.vmem (%p1244_p10), %s1448_s1, %s884_s28 }
  0x2b   : > { %v259_v0 = vld [vmem:[%s1273_s21] sm:$0xf] (%p1244_p10)  ;;  %v261_v1 = vld [vmem:[%s1273_s21 + $0x10] sm:$0xf] (%p1244_p10)  ;;  %s1280_s18 = scalar_lea.vmem (%p1244_p10), [#allocation4], %s925_s13 }
  0x2c   : > { %v263_v2 = vld [vmem:[%s1273_s21 + $0x20] sm:$0xf] (%p1244_p10)  ;;  %v265_v3 = vld [vmem:[%s1273_s21 + $0x30] sm:$0xf] (%p1244_p10)  ;;  %260 = vst [vmem:[%s1280_s18] sm:$0xf] (%p1244_p10), %v259_v0 }
  0x2d   : > { %v267_v4 = vld [vmem:[%s1273_s21 + $0x40] sm:$0xf] (%p1244_p10)  ;;  %262 = vst [vmem:[%s1280_s18 + $0x4] sm:$0xf] (%p1244_p10), %v261_v1  ;;  %264 = vst [vmem:[%s1280_s18 + $0x8] sm:$0xf] (%p1244_p10), %v263_v2 }
  0x2e   : > { %266 = vst [vmem:[%s1280_s18 + $0xc] sm:$0xf] (%p1244_p10), %v265_v3  ;;  %268 = vst [vmem:[%s1280_s18 + $0x10] sm:$0xf] (%p1244_p10), %v267_v4  ;;  %v269_v5 = vld [vmem:[%s1273_s21 + $0x50] sm:$0xf] (%p1244_p10) }
  0x2f   : > { %v271_v6 = vld [vmem:[%s1273_s21 + $0x60] sm:$0xf]  ;;  %v273_v7 = vld [vmem:[%s1273_s21 + $0x70] sm:$0xf]  ;;  %270 = vst [vmem:[%s1280_s18 + $0x14] sm:$0xf] %v269_v5 }
  0x30   : > { %272 = vst [vmem:[%s1280_s18 + $0x18] sm:$0xf] %v271_v6  ;;  %274 = vst [vmem:[%s1280_s18 + $0x1c] sm:$0xf] %v273_v7  ;;  %v275_v8 = vld [vmem:[%s1273_s21 + $0x80] sm:$0xf] }
  0x31   : > { %v277_v9 = vld [vmem:[%s1273_s21 + $0x90] sm:$0xf]  ;;  %v279_v10 = vld [vmem:[%s1273_s21 + $0xa0] sm:$0xf]  ;;  %276 = vst [vmem:[%s1280_s18 + $0x20] sm:$0xf] %v275_v8 }
  0x32   : > { %278 = vst [vmem:[%s1280_s18 + $0x24] sm:$0xf] %v277_v9  ;;  %280 = vst [vmem:[%s1280_s18 + $0x28] sm:$0xf] %v279_v10  ;;  %v281_v11 = vld [vmem:[%s1273_s21 + $0xb0] sm:$0xf] }
  0x33   : > { %v283_v12 = vld [vmem:[%s1273_s21 + $0xc0] sm:$0xf]  ;;  %v285_v13 = vld [vmem:[%s1273_s21 + $0xd0] sm:$0xf]  ;;  %282 = vst [vmem:[%s1280_s18 + $0x2c] sm:$0xf] %v281_v11 }
  0x34   : > { %284 = vst [vmem:[%s1280_s18 + $0x30] sm:$0xf] %v283_v12  ;;  %286 = vst [vmem:[%s1280_s18 + $0x34] sm:$0xf] %v285_v13  ;;  %v287_v14 = vld [vmem:[%s1273_s21 + $0xe0] sm:$0xf] }
  0x35   : > { %v289_v15 = vld [vmem:[%s1273_s21 + $0xf0] sm:$0xf]  ;;  %v291_v16 = vld [vmem:[%s1273_s21 + $0x100] sm:$0xf]  ;;  %288 = vst [vmem:[%s1280_s18 + $0x38] sm:$0xf] %v287_v14 }
  0x36   : > { %290 = vst [vmem:[%s1280_s18 + $0x3c] sm:$0xf] %v289_v15  ;;  %292 = vst [vmem:[%s1280_s18 + $0x40] sm:$0xf] %v291_v16  ;;  %v293_v17 = vld [vmem:[%s1273_s21 + $0x110] sm:$0xf] }
  0x37   : > { %v295_v18 = vld [vmem:[%s1273_s21 + $0x120] sm:$0xf]  ;;  %v297_v19 = vld [vmem:[%s1273_s21 + $0x130] sm:$0xf]  ;;  %294 = vst [vmem:[%s1280_s18 + $0x44] sm:$0xf] %v293_v17 }
  0x38   : > { %296 = vst [vmem:[%s1280_s18 + $0x48] sm:$0xf] %v295_v18  ;;  %298 = vst [vmem:[%s1280_s18 + $0x4c] sm:$0xf] %v297_v19  ;;  %v299_v20 = vld [vmem:[%s1273_s21 + $0x140] sm:$0xf] }
  0x39   : > { %v301_v21 = vld [vmem:[%s1273_s21 + $0x150] sm:$0xf]  ;;  %v303_v22 = vld [vmem:[%s1273_s21 + $0x160] sm:$0xf]  ;;  %300 = vst [vmem:[%s1280_s18 + $0x50] sm:$0xf] %v299_v20 }
  0x3a   : > { %302 = vst [vmem:[%s1280_s18 + $0x54] sm:$0xf] %v301_v21  ;;  %304 = vst [vmem:[%s1280_s18 + $0x58] sm:$0xf] %v303_v22  ;;  %v305_v23 = vld [vmem:[%s1273_s21 + $0x170] sm:$0xf] }
  0x3b   : > { %306 = vst [vmem:[%s1280_s18 + $0x5c] sm:$0xf] %v305_v23 }
  0x3c PF: > { %p885_p3 = scmp.ge.s32.totalorder %s1139_s12, 1  ;;  %p376_p4 = scmp.lt.s32.totalorder %s1139_s12, 5 }
  0x3e   : > { %p377_p5 = pnand %p885_p3, %p376_p4 }
  0x3f   : > { %s1328_s19 = sand.u32 (!%p377_p5), 1, %s1115_s30   ;;  %v1142_v24 = vmov (!%p377_p5), 0   ;;  %v1021_v25 = vld [vmem:[%s1449_s2 + $0x4] ss:$8 sps:$4 sm:$0xff] (!%p377_p5)   ;;  %vm559_vm0 = vcmask (!%p377_p5), 523264   ;;  %v447_v27 = vld [vmem:[%s1450_s3 + $0x10] sm:$0xff] (!%p377_p5)  ;;  %v691_v16 = vlaneseq (!%p377_p5) }
  0x40   : > { %380 = sbr.rel (%p377_p5) target bundleno = 643 (0x283), region = 81  ;;  %566 = vmatprep.subr.bf16.mxu0 (!%p377_p5), %v1142_v24  ;;  %1005 = vset.pattern.permute.xlu0 (!%p377_p5), %v1142_v24  ;;  %v445_v26 = vld [vmem:[%s1450_s3] sm:$0xff] (!%p377_p5)  ;;  %v446_v28 = vld [vmem:[%s1450_s3 + $0x8] sm:$0xff] (!%p377_p5)  ;;  %v448_v30 = vld [vmem:[%s1450_s3 + $0x18] sm:$0xff] (!%p377_p5)  ;;  %v1143_v47 = vmov (!%p377_p5), 0.0   ;;  %vm1144_vm1 = vmmov (!%p377_p5), 0  }
  0x41   : > { %s926_s22 = smul.u32 (!%p377_p5), 96, %s1328_s19  ;;  %1006 = vset.pattern.permute.xlu1 (!%p377_p5), %v1142_v24  ;;  %903 = vmatprep.mubr.msk.bf16.mxu0 (!%p377_p5), %vm559_vm0, %v1021_v25  ;;  %v622_v34 = vld [vmem:[%s1452_s5] sm:$0xff] (!%p377_p5)  ;;  %v1022_v45 = vld [vmem:[%s1449_s2 + $0x14] ss:$8 sps:$4 sm:$0xff] (!%p377_p5)   ;;  %v1024_v46 = vld [vmem:[%s1449_s2 + $0x10] ss:$8 sps:$4 sm:$0xff] (!%p377_p5)  }
  0x42   : > { %451 = vperm.xlu0 (!%p377_p5), %1005, %v445_v26   ;;  %461 = vperm.xlu1 (!%p377_p5), %1006, %v447_v27   ;;  %v678_v35 = vld [vmem:[%s1453_s6] sm:$0xff] (!%p377_p5)  ;;  %vm628_vm2 = vcmask (!%p377_p5), 261120   ;;  %s908_s28 = sshll.u32 (!%p377_p5), %s1127_s9, 7  ;;  %v692_v17 = vshrl.u32 (!%p377_p5), %v691_v16, 7  ;;  %s910_s25 = sshll.u32 (!%p377_p5), %s1127_s9, 1  ;;  %vm737_vm7 = vcmask (!%p377_p5), 1040384  }
  0x43   : > { %s1344_s18 = scalar_lea.vmem (!%p377_p5), [#allocation4], %s926_s22  ;;  %v1019_v44 = vld [vmem:[%s1449_s2] ss:$8 sps:$4 sm:$0xff] (!%p377_p5)   ;;  %917 = vmatprep.subr.bf16.mxu1 (!%p377_p5), %v1143_v47  ;;  %921 = vmatprep.mubr.msk.bf16.mxu1 (!%p377_p5), %vm1144_vm1, %v1143_v47  ;;  %s729_s13 = sadd.s32 (!%p377_p5), 1, %s908_s28  ;;  %vm745_vm8 = vcmask (!%p377_p5), 1041408   ;;  %vm747_vm9 = vcmask (!%p377_p5), 1043456  }
  0x44   : > { %v1007_v29 = vld [vmem:[%s1344_s18] sm:$0xff] (!%p377_p5)   ;;  %v1008_v31 = vld [vmem:[%s1344_s18 + $0x8] sm:$0xff] (!%p377_p5)   ;;  %v1009_v32 = vld [vmem:[%s1344_s18 + $0x10] sm:$0xff] (!%p377_p5)   ;;  %s727_s16 = sld [smem:[#allocation3 + %s908_s28]] (!%p377_p5)  ;;  %v696_v18 = vsub.s32 (!%p377_p5), 4, %v692_v17  ;;  %vm693_vm3 = vcmp.ge.s32.totalorder (!%p377_p5), %v692_v17, 5 }
  0x45   : > { %567 = vmatpush1.bf16.msra.mxu0 (!%p377_p5), %v1007_v29  ;;  %v1010_v33 = vld [vmem:[%s1344_s18 + $0x18] sm:$0xff] (!%p377_p5)   ;;  %v1011_v36 = vld [vmem:[%s1344_s18 + $0x20] sm:$0xff] (!%p377_p5)   ;;  %v1012_v37 = vld [vmem:[%s1344_s18 + $0x28] sm:$0xff] (!%p377_p5)   ;;  %s730_s17 = sld [smem:[#allocation3 + %s729_s13]] (!%p377_p5)  ;;  %vm732_vm4 = vcmp.eq.s32.totalorder (!%p377_p5), %v692_v17, 0  ;;  %s886_s22 = sshll.u32 (!%p377_p5), %s1328_s19, 5 }
  0x46   : > { %568 = vmatprep.subr.bf16.mxu0 (!%p377_p5), %v1142_v24  ;;  %456 = vperm.xlu0 (!%p377_p5), %1005, %v446_v28   ;;  %v1013_v38 = vld [vmem:[%s1344_s18 + $0x30] sm:$0xff] (!%p377_p5)   ;;  %v1014_v39 = vld [vmem:[%s1344_s18 + $0x38] sm:$0xff] (!%p377_p5)   ;;  %v1015_v40 = vld [vmem:[%s1344_s18 + $0x40] sm:$0xff] (!%p377_p5)   ;;  %s411_s9 = scalar_lea.vmem (!%p377_p5), [#allocation5], %s886_s22  ;;  %vm749_vm10 = vcmask (!%p377_p5), 1045504  }
  0x47   : > { %466 = vperm.xlu1 %1006, %v448_v30   ;;  %v1016_v41 = vld [vmem:[%s1344_s18 + $0x48] sm:$0xff]   ;;  %v1017_v42 = vld [vmem:[%s1344_s18 + $0x50] sm:$0xff]   ;;  %v1018_v43 = vld [vmem:[%s1344_s18 + $0x58] sm:$0xff]   ;;  %s786_s18 = sadd.s32 %s1123_s8, %s910_s25  ;;  %s792_s28 = sshll.u32 %s411_s9, 4  ;;  %s1393_s28 = int_to_ptr.vmem [resolvable:$true] %s792_s28 }
  0x48   : > { %v619_v6 = vld [vmem:[%s1451_s4] sm:$0xf]  ;;  %s911_s27 = sshll.u32 %s786_s18, 7 }
  0x49   : > { %569 = vmatpush1.bf16.msra.mxu0 %v1008_v31  ;;  %v907_v31 = vadd.s32 4294967291, %v692_v17 }
  0x4a   : > { %570 = vmatprep.subr.bf16.mxu0 %v1142_v24  ;;  %625 = vperm.xlu0 %1005, %v622_v34   ;;  %s728_s21 = scvt.s32.f32 %s727_s16  ;;  %s1391_s16 = scalar_lea.hbm %s1454_s7, %s911_s27 }
  0x4b   : > { %681 = vperm.xlu1 %1006, %v678_v35   ;;  %s731_s24 = scvt.s32.f32 %s730_s17  ;;  %s778_s17 = scalar_lea.sflag [#allocation6], %s1328_s19 }
  0x4c   : > { %v733_v27 = vstv %s728_s21  ;;  %s1043_s21 = scalar_lea.vmem %s1393_s28, 512 }
  0x4d   : > { %571 = vmatpush1.bf16.msra.mxu0 %v1009_v32  ;;  %v734_v28 = vstv %s731_s24  ;;  %p1044_p6 = scmp.ne.s32.totalorder %s1393_s28, %s1043_s21  ;;  %s1145_s24 = smov [#allocation5]  }
  0x4e   : > { %572 = vmatprep.subr.bf16.mxu0 %v1142_v24  ;;  %v735_v32 = vsel %vm732_vm4, %v733_v27, %v734_v28  ;;  %s1047_s25 = sshll.u32 %s1145_s24, 4  ;;  %s1048_s25 = int_to_ptr.vmem [resolvable:$false] %s1047_s25 }
  0x4f   : > { %p1045_p7 = pnand %p1044_p6, %p1252_p12  ;;  %s1049_s22 = scalar_lea.vmem %s1048_s25, 1024 }
  0x50   : > { %p1050_p9 = scmp.lt.s32.totalorder %s1393_s28, %s1048_s25  ;;  %p1051_p10 = scmp.lt.s32.totalorder %s1049_s22, %s1043_s21 }
  0x51   : > { %573 = vmatpush1.bf16.msra.mxu0 %v1010_v33  ;;  %p1046_p8 = pneg %p1045_p7 }
  0x52   : > { %574 = vmatprep.subr.bf16.mxu0 %v1142_v24  ;;  %p1052_p11 = por %p1051_p10, %p1050_p9 }
  0x54   : > { %p1053_p13 = pnand %p1052_p11, %p1046_p8 }
  0x55   : > { %575 = vmatpush1.bf16.msra.mxu0 %v1011_v36  ;;  %v708_v36 = vcvt.s32.f32 %v907_v31 }
  0x56   : > { %576 = vmatprep.subr.bf16.mxu0 %v1142_v24 }
  0x59   : > { %577 = vmatpush1.bf16.msra.mxu0 %v1012_v37 }
  0x5a   : > { %578 = vmatprep.subr.bf16.mxu0 %v1142_v24 }
  0x5d   : > { %579 = vmatpush1.bf16.msra.mxu0 %v1013_v38 }
  0x5e   : > { %580 = vmatprep.subr.bf16.mxu0 %v1142_v24 }
  0x61   : > { %581 = vmatpush1.bf16.msra.mxu0 %v1014_v39 }
  0x62   : > { %582 = vmatprep.subr.bf16.mxu0 %v1142_v24 }
  0x65   : > { %583 = vmatpush1.bf16.msra.mxu0 %v1015_v40 }
  0x66   : > { %584 = vmatprep.subr.bf16.mxu0 %v1142_v24 }
  0x69   : > { %585 = vmatpush1.bf16.msra.mxu0 %v1016_v41 }
  0x6a   : > { %586 = vmatprep.subr.bf16.mxu0 %v1142_v24 }
  0x6d   : > { %587 = vmatpush1.bf16.msra.mxu0 %v1017_v42 }
  0x6e   : > { %588 = vmatprep.subr.bf16.mxu0 %v1142_v24 }
  0x71   : > { %589 = vmatpush1.bf16.msra.mxu0 %v1018_v43 }
  0x74   : > { %599 = vmatmul.mubr.bf16.vlgmr.msra.gmra.mrb[0].mxu0 %v1019_v44 }
  0x75   : > { %904 = vmatprep.mubr.msk.bf16.mxu0 %vm559_vm0, %v1022_v45 }
  0x7c   : > { %607 = vmatmul.mubr.bf16.gmra.mrb[4].mxu0 %v1024_v46 }
  0xc1   : > { %v452_v48 = vpop.permute.xlu0 %451  ;;  %v462_v56 = vpop.permute.xlu1 %461 }
  0xc5   : > { %v457_v52 = vpop.permute.xlu0 %456 }
  0xc6   : > { %v467_v63 = vpop.permute.xlu1 %466 }
  0xc9   : > { %v626_v7 = vpop.permute.xlu0 %625 }
  0xca   : > { %v682_v20 = vpop.permute.xlu1 %681 }
 0x147   : > { %v600_v49 = vpop.f32.mrb[0].mxu0 }
 0x148   : > { %v601_v50 = vadd.f32 %v600_v49, %v452_v48  ;;  %v602_v51 = vpop.f32.mrb[1].mxu0 }
 0x149   : > { %v603_v53 = vpop.f32.mrb[2].mxu0 }
 0x14a   : > { %v604_v54 = vadd.f32 %v603_v53, %v457_v52  ;;  %v605_v55 = vpop.f32.mrb[3].mxu0  ;;  %v615_v57 = vmax.f32 %v601_v50, 0.0 }
 0x14c   : > { %v616_v58 = vmax.f32 %v604_v54, 0.0 }
 0x14e   : > { %v620_v59 = vpack.c.bf16 %v616_v58, %v615_v57 }
 0x14f   : > { %v608_v60 = vpop.f32.mrb[4].mxu0 }
 0x150   : > { %v609_v61 = vadd.f32 %v608_v60, %v462_v56  ;;  %v610_v62 = vpop.f32.mrb[5].mxu0  ;;  %918 = vmatpush3.bf16.msra.mxu1 %v620_v59 }
 0x151   : > { %v611_v0 = vpop.f32.mrb[6].mxu0  ;;  %919 = vmatprep.subr.bf16.mxu1 %v1143_v47 }
 0x152   : > { %v612_v1 = vadd.f32 %v611_v0, %v467_v63  ;;  %v613_v2 = vpop.f32.mrb[7].mxu0  ;;  %v617_v3 = vmax.f32 %v609_v61, 0.0 }
 0x154   : > { %v618_v4 = vmax.f32 %v612_v1, 0.0 }
 0x156   : > { %v621_v5 = vpack.c.bf16 %v618_v4, %v617_v3 }
 0x158   : > { %920 = vmatpush3.bf16.msra.mxu1 %v621_v5 }
 0x15b   : > { %922 = vmatmul.mubr.msk.bf16.vlgmr.msra.gmra.mrb[0].mxu1 %vm628_vm2, %v619_v6 }
 0x22e   : > { %v666_v8 = vpop.f32.mrb[0].mxu1 }
 0x22f   : > { %v667_v9 = vadd.f32 %v666_v8, %v626_v7  ;;  %v923_v10 = vpop.f32.mrb[1].mxu1 }
 0x230   : > { %v669_v11 = vpop.f32.mrb[2].mxu1 }
 0x231   : > { %v906_v12 = vmul.f32 -1.442695, %v667_v9  ;;  %v924_v13 = vpop.f32.mrb[3].mxu1 }
 0x233   : > { %1025 = vpow2.f32 %v906_v12 }
 0x23d   : > { %v1026_v14 = vpop.eup %1025 }
 0x23e   : > { %v675_v15 = vadd.f32 1.0, %v1026_v14 }
 0x240   : > { %1027 = vrcp.f32 %v675_v15 }
 0x241   : > { %1029 = vrcp.f32 %v735_v32 }
 0x24a   : > { %v1028_v19 = vpop.eup %1027 }
 0x24b   : > { %v684_v21 = vmul.f32 %v1028_v19, %v682_v20  ;;  %v1030_v47 = vpop.eup %1029 }
 0x24d   : > { %v697_v22 = vrot.slane %v684_v21, %v696_v18  ;;  %v685_v29 = vmul.f32 0.5, %v684_v21 }
 0x24f   : > { %v698_v23 = vmul.f32 %v697_v22, %v684_v21  ;;  %v687_v34 = vrot.slane %v685_v29, 2 }
 0x251   : > { %v699_v24 = vsel %vm693_vm3, %v698_v23, -inf  ;;  %v689_v38 = vsub.f32 %v684_v21, %v687_v34  ;;  %v690_v39 = vadd.f32 %v687_v34, %v684_v21 }
 0x252   : > { %v700_v25 = vrot.slane %v699_v24, 4 }
 0x254   : > { %v701_v26 = vmax.f32 %v699_v24, %v700_v25 }
 0x256   : > { %v702_v30 = vrot.slane %v701_v26, 2 }
 0x258   : > { %v703_v33 = vmax.f32 %v701_v26, %v702_v30 }
 0x25a   : > { %v704_v35 = vrot.slane %v703_v33, 1 }
 0x25c   : > { %v705_v37 = vmax.f32 %v703_v33, %v704_v35 }
 0x25e   : > { %vm706_vm5 = vcmp.ge.f32.partialorder %v699_v24, %v705_v37  ;;  %vm716_vm6 = vcmp.gt.f32.partialorder %v705_v37, 0.25 }
 0x25f   : > { %v709_v40 = vsel %vm706_vm5, %v708_v36, 3.0  ;;  %v719_v42 = vsel %vm716_vm6, %v689_v38, 0.0  ;;  %v720_v43 = vsel %vm716_vm6, %v690_v39, 0.0  ;;  %v721_v60 = vsel %vm716_vm6, %v705_v37, 0.0 }
 0x260   : > { %v710_v41 = vrot.slane %v709_v40, 4  ;;  %v725_v45 = vsub.f32 %v720_v43, %v719_v42  ;;  %v723_v46 = vadd.f32 %v720_v43, %v719_v42  ;;  %v758_v51 = vmul.f32 %v1030_v47, %v720_v43 }
 0x261   : > { %v740_v55 = vrot.slane %v720_v43, 6  ;;  %v757_v63 = vmul.f32 %v1030_v47, %v719_v42 }
 0x262   : > { %v711_v44 = vmin.f32 %v709_v40, %v710_v41  ;;  %v724_v50 = vmul.f32 0.5, %v723_v46  ;;  %v766_v52 = vmul.f32 %v1030_v47, %v725_v45  ;;  %v752_v56 = vrot.slane %v725_v45, 6 }
 0x263   : > { %v760_v57 = vrot.slane %v758_v51, 6  ;;  %v746_v1 = vsel %vm745_vm8, %v719_v42, %v740_v55 }
 0x264   : > { %v712_v48 = vrot.slane %v711_v44, 2  ;;  %v765_v58 = vmul.f32 %v1030_v47, %v724_v50  ;;  %v768_v59 = vrot.slane %v766_v52, 6  ;;  %v754_v2 = vsel %vm745_vm8, %v724_v50, %v752_v56 }
 0x265   : > { %v762_v3 = vsel %vm745_vm8, %v757_v63, %v760_v57 }
 0x266   : > { %v713_v49 = vmin.f32 %v711_v44, %v712_v48  ;;  %v770_v4 = vsel %vm745_vm8, %v765_v58, %v768_v59 }
 0x268   : > { %v714_v53 = vrot.slane %v713_v49, 1 }
 0x26a   : > { %v715_v54 = vmin.f32 %v713_v49, %v714_v53 }
 0x26c   : > { %v722_v61 = vsel %vm716_vm6, %v715_v54, 0.0 }
 0x26d   : > { %v738_v62 = vsel %vm737_vm7, %v721_v60, %v722_v61 }
 0x26e   : > { %v743_v0 = vrot.slane %v738_v62, 4 }
 0x270   : > { %v748_v5 = vsel %vm747_vm9, %v746_v1, %v743_v0  ;;  %v755_v6 = vsel %vm747_vm9, %v754_v2, %v743_v0  ;;  %v763_v7 = vsel %vm747_vm9, %v762_v3, %v743_v0  ;;  %v771_v8 = vsel %vm747_vm9, %v770_v4, %v743_v0 }
 0x271   : > { %v750_v9 = vsel %vm749_vm10, %v748_v5, 0.0  ;;  %v756_v10 = vsel %vm749_vm10, %v755_v6, 0.0  ;;  %v764_v11 = vsel %vm749_vm10, %v763_v7, 0.0  ;;  %v772_v12 = vsel %vm749_vm10, %v771_v8, 0.0 }
 0x272   : > { %773 = vst [vmem:[%s411_s9] sm:$0xff] %v750_v9  ;;  %774 = vst [vmem:[%s411_s9 + $0x8] sm:$0xff] %v756_v10 }
 0x273   : > { %775 = vst [vmem:[%s411_s9 + $0x10] sm:$0xff] %v764_v11  ;;  %776 = vst [vmem:[%s411_s9 + $0x18] sm:$0xff] %v772_v12 }
 0x274   : > { %1056 = shalt.err (!%p1053_p13)
}
 0x275   : > { %s1057_s18 = scalar_lea.hbm %s1391_s16, 512  ;;  %s1061_s8 = scalar_lea.hbm %s1454_s7, 2048 }
 0x276   : > { %p1058_p1 = scmp.ne.s32.totalorder %s1391_s16, %s1057_s18  ;;  %p1062_p4 = scmp.lt.u32.totalorder %s1391_s16, %s1454_s7 }
 0x277   : > { %p1063_p5 = scmp.lt.u32.totalorder %s1061_s8, %s1057_s18  ;;  %p1065_p7 = scmp.lt.u32.totalorder %s1057_s18, %s1391_s16 }
 0x278   : > { %p1059_p2 = pnand %p1058_p1, %p1252_p12 }
 0x279   : > { %p1064_p6 = por %p1063_p5, %p1062_p4 }
 0x27a   : > { %p1060_p3 = pneg %p1059_p2 }
 0x27b   : > { %p1066_p8 = por %p1065_p7, %p1064_p6 }
 0x27d   : > { %p1067_p9 = pnand %p1066_p8, %p1060_p3 }
 0x27f   : > { %1070 = shalt.err (!%p1067_p9)
}
 0x280   : > { %s1146_s21 = smov 128   ;;  %s1147_s25 = smov 512  }
 0x281   : > { %s1148_s22 = smov 8  }
 0x282   : > { %927 = dma.vmem_to_hbm [thread:$0]  (%p1252_p12), %s1393_s28, 512, %s1391_s16, %s778_s17, %s1146_s21, %s1147_s25, %s1148_s22  }
 0x283 PF: > { %p933_p10 = scmp.ge.s32.totalorder %s1139_s12, 2  ;;  %s807_s27 = sand.u32 1, %s1111_s29  }
 0x284   : > { %s808_s18 = scalar_lea.sflag [#allocation6], %s807_s27 }
 0x285   : > { %p930_p11 = pnand %p933_p10, %p1258_p0 }
 0x287   : > { %1106 = dma.done.wait (!%p930_p11), %s808_s18, 512  }
 0x288   : > { %1108 = vsyncadd (!%p930_p11), %s808_s18, 4294966784  ;;  %s26_s12 = sadd.s32 1, %s1139_s12   ;;  %s1458_s29 = smov %s1115_s30 }
 0x289   : > { %p23_p13 = scmp.ge.s32.totalorder %s26_s12, 6   ;;  %s1459_s30 = smov %s1119_s0 }
 0x28a   : > { %s1460_s0 = smov %s1264_s26  ;;  %s1461_s8 = smov %s1131_s10 }
 0x28b   : > { %s1462_s9 = smov %s1135_s11  ;;  %s1463_s10 = smov %s1466_s14 }
 0x28c   : > { %s1464_s11 = smov %s1470_s15  ;;  %25 = sbr.rel (!%p23_p13) target bundleno = 20 (0x14), region = 125 }
 0x293   :  { %813 = vsyncpa [#allocation6], 1 }
 0x294   :  { %815 = vsyncpa [#allocation6 + $0x1], 1 }

</bundles_post_ra>
